<compile_context>
chip_gen: v7x
topology: tpu7x:2x2x1
jax: 0.10.0
libtpu: 0.0.40
codegen_flags: <defaults>
</compile_context>

<pallas_src>
import functools

import jax
import jax.numpy as jnp
from jax.experimental import pallas as pl
from jax.experimental.pallas import tpu as pltpu

LANE = 128


def _round_up(x, m):
    return ((x + m - 1) // m) * m


def sage_mean_kernel(nbr_ref, h_ref, ws_ref, wn_ref, out_ref, feat_ref, *, num_neighbors):
    """One node-tile of the SAGE 'mean' forward.

    nbr_ref : SMEM int32 [Np*K]   flattened sampled-neighbor table (scalar prefetch)
    h_ref   : VMEM f32   [Np,Fp]  all node features (resident across the grid)
    ws_ref  : VMEM bf16  [Fp,Fo]  self-feature half of W (resident)
    wn_ref  : VMEM bf16  [Fp,Fo]  neighbor-feature half of W (resident)
    out_ref : VMEM f32   [TM,Fo]  output tile (lane-dense, Fo multiple of 128)
    feat_ref: VMEM f32   [TM,Fp]  scratch for aggregated neighbor means
    """
    i = pl.program_id(0)
    tm = out_ref.shape[0]
    row_base = i * tm
    inv_k = jnp.float32(1.0 / num_neighbors)   # mask.sum(1) == K always -> constant scale

    # ---- gather + mean over the K sampled neighbors (O(TM*K*Fp)) ----
    @pl.loop(0, tm // 8)
    def _(g):
        g8 = pl.multiple_of(g * 8, 8)
        rows = []
        for r in range(8):                        # static unroll: one sublane group
            base = (row_base + g8 + r) * num_neighbors
            acc = h_ref[pl.ds(nbr_ref[base], 1), :]
            for k in range(1, num_neighbors):     # static unroll over K
                acc = acc + h_ref[pl.ds(nbr_ref[base + k], 1), :]
            rows.append(acc)
        # one aligned 8-row store per group (f32 elementwise scale, safe on v5e too)
        feat_ref[pl.ds(g8, 8), :] = jnp.concatenate(rows, axis=0) * inv_k

    # ---- projection: h_tile @ W_self + feat @ W_neigh (two K=Fp bf16 MXU matmuls,
    #      f32 accumulation; avoids materializing cat([h, feat]) in VMEM) ----
    h_self = h_ref[pl.ds(pl.multiple_of(row_base, tm), tm), :]
    out_ref[...] = (
        jnp.dot(h_self.astype(jnp.bfloat16), ws_ref[...],
                preferred_element_type=jnp.float32)
        + jnp.dot(feat_ref[...].astype(jnp.bfloat16), wn_ref[...],
                  preferred_element_type=jnp.float32)
    )


def graphsage_mean_forward(h, aggregate_neighbors, W, *, tile_m=128):
    """h: [N,F] f32, aggregate_neighbors: [N,K] int32, W: [2F,out] f32 -> [N,out] f32."""
    N, F = h.shape
    K = int(aggregate_neighbors.shape[1])
    out_feat = W.shape[1]
    assert W.shape[0] == 2 * F

    Fp = _round_up(max(F, 1), LANE)          # lane-dense feature dim
    Fo = _round_up(max(out_feat, 1), LANE)   # lane-dense output dim (unmasked vst)
    TM = tile_m
    Np = _round_up(max(N, 1), TM)            # node rows padded to whole tiles

    # Zero-pad features / weights; padded rows/cols contribute exactly 0 to the output.
    h_pad = jnp.zeros((Np, Fp), jnp.float32).at[:N, :F].set(h.astype(jnp.float32))
    ws_pad = jnp.zeros((Fp, Fo), jnp.float32).at[:F, :out_feat].set(
        W[:F].astype(jnp.float32)).astype(jnp.bfloat16)   # W_self  (bf16 MXU operand)
    wn_pad = jnp.zeros((Fp, Fo), jnp.float32).at[:F, :out_feat].set(
        W[F:].astype(jnp.float32)).astype(jnp.bfloat16)   # W_neigh (bf16 MXU operand)

    # Flattened neighbor table -> compact 1-D SMEM layout (padded nodes point at row 0).
    nbr = jnp.zeros((Np, K), jnp.int32).at[:N].set(aggregate_neighbors.astype(jnp.int32))
    nbr_flat = nbr.reshape(-1)

    kernel = functools.partial(sage_mean_kernel, num_neighbors=K)

    cost = pl.CostEstimate(
        flops=int(Np * K * Fp + 4 * Np * Fp * Fo),
        transcendentals=0,
        bytes_accessed=int(Np * Fp * 4 + 2 * Fp * Fo * 2 + Np * K * 4 + Np * Fo * 4),
    )

    out_pad = pl.pallas_call(
        kernel,
        out_shape=jax.ShapeDtypeStruct((Np, Fo), jnp.float32),
        grid_spec=pltpu.PrefetchScalarGridSpec(
            num_scalar_prefetch=1,
            grid=(Np // TM,),
            in_specs=[
                pl.BlockSpec((Np, Fp), lambda i, nbr: (0, 0)),       # h: resident
                pl.BlockSpec((Fp, Fo), lambda i, nbr: (0, 0)),       # W_self: resident
                pl.BlockSpec((Fp, Fo), lambda i, nbr: (0, 0)),       # W_neigh: resident
            ],
            out_specs=pl.BlockSpec((TM, Fo), lambda i, nbr: (i, 0)),  # lane-dense tile
            scratch_shapes=[pltpu.VMEM((TM, Fp), jnp.float32)],
        ),
        compiler_params=pltpu.CompilerParams(
            dimension_semantics=("parallel",),        # node tiles split across TCs (v7x)
            vmem_limit_bytes=64 * 1024 * 1024,
        ),
        cost_estimate=cost,
    )(nbr_flat, h_pad, ws_pad, wn_pad)

    return out_pad[:N, :out_feat]


if __name__ == "__main__":
    # Small, deterministic example shapes (exercises N / F / out_feat padding paths).
    N = 200
    features_dim = 64
    out_feat_dim = 32
    aggregate_num = 5

    key = jax.random.PRNGKey(0)
    k_h, k_w, k_nb = jax.random.split(key, 3)

    # Node features.
    h = jax.random.normal(k_h, (N, features_dim), dtype=jnp.float32)

    # Parameter W: xavier_uniform_ over shape (2F, out_feat).
    fan_in, fan_out = 2 * features_dim, out_feat_dim
    bound = (6.0 / (fan_in + fan_out)) ** 0.5
    W = jax.random.uniform(k_w, (2 * features_dim, out_feat_dim),
                           minval=-bound, maxval=bound, dtype=jnp.float32)

    # Deterministic sampled neighbors (stand-in for host-side aggregate_neighbors_sample).
    aggregate_neighbors = jax.random.randint(
        k_nb, (N, aggregate_num), minval=0, maxval=N, dtype=jnp.int32)

    # Pallas kernel forward.
    out = graphsage_mean_forward(h, aggregate_neighbors, W)
    out = jax.block_until_ready(out)

    # Pure-JAX reference (identical semantics: mask@h with duplicate counting, /K, cat, @W).
    feat_ref = jnp.mean(h[aggregate_neighbors], axis=1)
    ref = jnp.concatenate([h, feat_ref], axis=1) @ W

    assert out.shape == (N, out_feat_dim)
    # bf16 MXU operands (f32 accumulation) -> slightly relaxed tolerance vs pure-f32 ref.
    assert jnp.allclose(out, ref, atol=5e-2, rtol=5e-2), float(jnp.max(jnp.abs(out - ref)))

    # TODO(synk): 'gcn' / 'maxpool' / 'lstm' aggregation branches (incl. nn.LSTM) and the
    # host-side numpy neighbor sampling (aggregate_neighbors_sample) are not implemented.
    print("KERNEL_OK")
</pallas_src>

<mosaic_0001>
module attributes {stable_mosaic.version = 11 : i64} {
  func.func @sage_mean_kernel(%arg0: i32, %arg1: memref<1280xi32, #tpu.memory_space<smem>>, %arg2: memref<256x128xf32, #tpu.memory_space<vmem>>, %arg3: memref<128x128xbf16, #tpu.memory_space<vmem>>, %arg4: memref<128x128xbf16, #tpu.memory_space<vmem>>, %arg5: memref<128x128xf32, #tpu.memory_space<vmem>>, %arg6: memref<128x128xf32, #tpu.memory_space<vmem>>) attributes {dimension_semantics = [#tpu.dimension_semantics<parallel>], iteration_bounds = array<i64: 2>, scalar_prefetch = 1 : i64, scratch_operands = 1 : i64, tpu.core_type = #tpu.core_type<tc>, window_params = [{pipeline_mode = #tpu.pipeline_mode<synchronous>, transform_indices = @transform_0, window_bounds = array<i64: 256, 128>}, {pipeline_mode = #tpu.pipeline_mode<synchronous>, transform_indices = @transform_1, window_bounds = array<i64: 128, 128>}, {pipeline_mode = #tpu.pipeline_mode<synchronous>, transform_indices = @transform_2, window_bounds = array<i64: 128, 128>}, {transform_indices = @transform_3, window_bounds = array<i64: 128, 128>}]} {
    %c128_i32 = arith.constant 128 : i32
    %0 = arith.muli %arg0, %c128_i32 : i32
    %cst = arith.constant 2.000000e-01 : f32
    %c0_i32 = arith.constant 0 : i32
    %c16_i32 = arith.constant 16 : i32
    %1 = arith.addi %c0_i32, %c16_i32 : i32
    %c1_i32 = arith.constant 1 : i32
    scf.for %arg7 = %c0_i32 to %1 step %c1_i32  : i32 {
      %c1_i32_11 = arith.constant 1 : i32
      %14 = arith.muli %arg7, %c1_i32_11 : i32
      %c0_i32_12 = arith.constant 0 : i32
      %15 = arith.addi %c0_i32_12, %14 : i32
      %c8_i32 = arith.constant 8 : i32
      %16 = arith.muli %15, %c8_i32 : i32
      %17 = tpu.assume_multiple %16, 8 : i32
      %18 = arith.addi %0, %17 : i32
      %c0_i32_13 = arith.constant 0 : i32
      %19 = arith.addi %18, %c0_i32_13 : i32
      %c5_i32 = arith.constant 5 : i32
      %20 = arith.muli %19, %c5_i32 : i32
      %21 = arith.index_cast %20 : i32 to index
      %22 = memref.load %arg1[%21] : memref<1280xi32, #tpu.memory_space<smem>>
      %23 = arith.index_cast %22 : i32 to index
      %c0_14 = arith.constant 0 : index
      %24 = vector.load %arg2[%23, %c0_14] : memref<256x128xf32, #tpu.memory_space<vmem>>, vector<1x128xf32>
      %c1_i32_15 = arith.constant 1 : i32
      %25 = arith.addi %20, %c1_i32_15 : i32
      %26 = arith.index_cast %25 : i32 to index
      %27 = memref.load %arg1[%26] : memref<1280xi32, #tpu.memory_space<smem>>
      %28 = arith.index_cast %27 : i32 to index
      %c0_16 = arith.constant 0 : index
      %29 = vector.load %arg2[%28, %c0_16] : memref<256x128xf32, #tpu.memory_space<vmem>>, vector<1x128xf32>
      %30 = arith.addf %24, %29 : vector<1x128xf32>
      %c2_i32 = arith.constant 2 : i32
      %31 = arith.addi %20, %c2_i32 : i32
      %32 = arith.index_cast %31 : i32 to index
      %33 = memref.load %arg1[%32] : memref<1280xi32, #tpu.memory_space<smem>>
      %34 = arith.index_cast %33 : i32 to index
      %c0_17 = arith.constant 0 : index
      %35 = vector.load %arg2[%34, %c0_17] : memref<256x128xf32, #tpu.memory_space<vmem>>, vector<1x128xf32>
      %36 = arith.addf %30, %35 : vector<1x128xf32>
      %c3_i32 = arith.constant 3 : i32
      %37 = arith.addi %20, %c3_i32 : i32
      %38 = arith.index_cast %37 : i32 to index
      %39 = memref.load %arg1[%38] : memref<1280xi32, #tpu.memory_space<smem>>
      %40 = arith.index_cast %39 : i32 to index
      %c0_18 = arith.constant 0 : index
      %41 = vector.load %arg2[%40, %c0_18] : memref<256x128xf32, #tpu.memory_space<vmem>>, vector<1x128xf32>
      %42 = arith.addf %36, %41 : vector<1x128xf32>
      %c4_i32 = arith.constant 4 : i32
      %43 = arith.addi %20, %c4_i32 : i32
      %44 = arith.index_cast %43 : i32 to index
      %45 = memref.load %arg1[%44] : memref<1280xi32, #tpu.memory_space<smem>>
      %46 = arith.index_cast %45 : i32 to index
      %c0_19 = arith.constant 0 : index
      %47 = vector.load %arg2[%46, %c0_19] : memref<256x128xf32, #tpu.memory_space<vmem>>, vector<1x128xf32>
      %48 = arith.addf %42, %47 : vector<1x128xf32>
      %49 = arith.addi %0, %17 : i32
      %c1_i32_20 = arith.constant 1 : i32
      %50 = arith.addi %49, %c1_i32_20 : i32
      %c5_i32_21 = arith.constant 5 : i32
      %51 = arith.muli %50, %c5_i32_21 : i32
      %52 = arith.index_cast %51 : i32 to index
      %53 = memref.load %arg1[%52] : memref<1280xi32, #tpu.memory_space<smem>>
      %54 = arith.index_cast %53 : i32 to index
      %c0_22 = arith.constant 0 : index
      %55 = vector.load %arg2[%54, %c0_22] : memref<256x128xf32, #tpu.memory_space<vmem>>, vector<1x128xf32>
      %c1_i32_23 = arith.constant 1 : i32
      %56 = arith.addi %51, %c1_i32_23 : i32
      %57 = arith.index_cast %56 : i32 to index
      %58 = memref.load %arg1[%57] : memref<1280xi32, #tpu.memory_space<smem>>
      %59 = arith.index_cast %58 : i32 to index
      %c0_24 = arith.constant 0 : index
      %60 = vector.load %arg2[%59, %c0_24] : memref<256x128xf32, #tpu.memory_space<vmem>>, vector<1x128xf32>
      %61 = arith.addf %55, %60 : vector<1x128xf32>
      %c2_i32_25 = arith.constant 2 : i32
      %62 = arith.addi %51, %c2_i32_25 : i32
      %63 = arith.index_cast %62 : i32 to index
      %64 = memref.load %arg1[%63] : memref<1280xi32, #tpu.memory_space<smem>>
      %65 = arith.index_cast %64 : i32 to index
      %c0_26 = arith.constant 0 : index
      %66 = vector.load %arg2[%65, %c0_26] : memref<256x128xf32, #tpu.memory_space<vmem>>, vector<1x128xf32>
      %67 = arith.addf %61, %66 : vector<1x128xf32>
      %c3_i32_27 = arith.constant 3 : i32
      %68 = arith.addi %51, %c3_i32_27 : i32
      %69 = arith.index_cast %68 : i32 to index
      %70 = memref.load %arg1[%69] : memref<1280xi32, #tpu.memory_space<smem>>
      %71 = arith.index_cast %70 : i32 to index
      %c0_28 = arith.constant 0 : index
      %72 = vector.load %arg2[%71, %c0_28] : memref<256x128xf32, #tpu.memory_space<vmem>>, vector<1x128xf32>
      %73 = arith.addf %67, %72 : vector<1x128xf32>
      %c4_i32_29 = arith.constant 4 : i32
      %74 = arith.addi %51, %c4_i32_29 : i32
      %75 = arith.index_cast %74 : i32 to index
      %76 = memref.load %arg1[%75] : memref<1280xi32, #tpu.memory_space<smem>>
      %77 = arith.index_cast %76 : i32 to index
      %c0_30 = arith.constant 0 : index
      %78 = vector.load %arg2[%77, %c0_30] : memref<256x128xf32, #tpu.memory_space<vmem>>, vector<1x128xf32>
      %79 = arith.addf %73, %78 : vector<1x128xf32>
      %80 = arith.addi %0, %17 : i32
      %c2_i32_31 = arith.constant 2 : i32
      %81 = arith.addi %80, %c2_i32_31 : i32
      %c5_i32_32 = arith.constant 5 : i32
      %82 = arith.muli %81, %c5_i32_32 : i32
      %83 = arith.index_cast %82 : i32 to index
      %84 = memref.load %arg1[%83] : memref<1280xi32, #tpu.memory_space<smem>>
      %85 = arith.index_cast %84 : i32 to index
      %c0_33 = arith.constant 0 : index
      %86 = vector.load %arg2[%85, %c0_33] : memref<256x128xf32, #tpu.memory_space<vmem>>, vector<1x128xf32>
      %c1_i32_34 = arith.constant 1 : i32
      %87 = arith.addi %82, %c1_i32_34 : i32
      %88 = arith.index_cast %87 : i32 to index
      %89 = memref.load %arg1[%88] : memref<1280xi32, #tpu.memory_space<smem>>
      %90 = arith.index_cast %89 : i32 to index
      %c0_35 = arith.constant 0 : index
      %91 = vector.load %arg2[%90, %c0_35] : memref<256x128xf32, #tpu.memory_space<vmem>>, vector<1x128xf32>
      %92 = arith.addf %86, %91 : vector<1x128xf32>
      %c2_i32_36 = arith.constant 2 : i32
      %93 = arith.addi %82, %c2_i32_36 : i32
      %94 = arith.index_cast %93 : i32 to index
      %95 = memref.load %arg1[%94] : memref<1280xi32, #tpu.memory_space<smem>>
      %96 = arith.index_cast %95 : i32 to index
      %c0_37 = arith.constant 0 : index
      %97 = vector.load %arg2[%96, %c0_37] : memref<256x128xf32, #tpu.memory_space<vmem>>, vector<1x128xf32>
      %98 = arith.addf %92, %97 : vector<1x128xf32>
      %c3_i32_38 = arith.constant 3 : i32
      %99 = arith.addi %82, %c3_i32_38 : i32
      %100 = arith.index_cast %99 : i32 to index
      %101 = memref.load %arg1[%100] : memref<1280xi32, #tpu.memory_space<smem>>
      %102 = arith.index_cast %101 : i32 to index
      %c0_39 = arith.constant 0 : index
      %103 = vector.load %arg2[%102, %c0_39] : memref<256x128xf32, #tpu.memory_space<vmem>>, vector<1x128xf32>
      %104 = arith.addf %98, %103 : vector<1x128xf32>
      %c4_i32_40 = arith.constant 4 : i32
      %105 = arith.addi %82, %c4_i32_40 : i32
      %106 = arith.index_cast %105 : i32 to index
      %107 = memref.load %arg1[%106] : memref<1280xi32, #tpu.memory_space<smem>>
      %108 = arith.index_cast %107 : i32 to index
      %c0_41 = arith.constant 0 : index
      %109 = vector.load %arg2[%108, %c0_41] : memref<256x128xf32, #tpu.memory_space<vmem>>, vector<1x128xf32>
      %110 = arith.addf %104, %109 : vector<1x128xf32>
      %111 = arith.addi %0, %17 : i32
      %c3_i32_42 = arith.constant 3 : i32
      %112 = arith.addi %111, %c3_i32_42 : i32
      %c5_i32_43 = arith.constant 5 : i32
      %113 = arith.muli %112, %c5_i32_43 : i32
      %114 = arith.index_cast %113 : i32 to index
      %115 = memref.load %arg1[%114] : memref<1280xi32, #tpu.memory_space<smem>>
      %116 = arith.index_cast %115 : i32 to index
      %c0_44 = arith.constant 0 : index
      %117 = vector.load %arg2[%116, %c0_44] : memref<256x128xf32, #tpu.memory_space<vmem>>, vector<1x128xf32>
      %c1_i32_45 = arith.constant 1 : i32
      %118 = arith.addi %113, %c1_i32_45 : i32
      %119 = arith.index_cast %118 : i32 to index
      %120 = memref.load %arg1[%119] : memref<1280xi32, #tpu.memory_space<smem>>
      %121 = arith.index_cast %120 : i32 to index
      %c0_46 = arith.constant 0 : index
      %122 = vector.load %arg2[%121, %c0_46] : memref<256x128xf32, #tpu.memory_space<vmem>>, vector<1x128xf32>
      %123 = arith.addf %117, %122 : vector<1x128xf32>
      %c2_i32_47 = arith.constant 2 : i32
      %124 = arith.addi %113, %c2_i32_47 : i32
      %125 = arith.index_cast %124 : i32 to index
      %126 = memref.load %arg1[%125] : memref<1280xi32, #tpu.memory_space<smem>>
      %127 = arith.index_cast %126 : i32 to index
      %c0_48 = arith.constant 0 : index
      %128 = vector.load %arg2[%127, %c0_48] : memref<256x128xf32, #tpu.memory_space<vmem>>, vector<1x128xf32>
      %129 = arith.addf %123, %128 : vector<1x128xf32>
      %c3_i32_49 = arith.constant 3 : i32
      %130 = arith.addi %113, %c3_i32_49 : i32
      %131 = arith.index_cast %130 : i32 to index
      %132 = memref.load %arg1[%131] : memref<1280xi32, #tpu.memory_space<smem>>
      %133 = arith.index_cast %132 : i32 to index
      %c0_50 = arith.constant 0 : index
      %134 = vector.load %arg2[%133, %c0_50] : memref<256x128xf32, #tpu.memory_space<vmem>>, vector<1x128xf32>
      %135 = arith.addf %129, %134 : vector<1x128xf32>
      %c4_i32_51 = arith.constant 4 : i32
      %136 = arith.addi %113, %c4_i32_51 : i32
      %137 = arith.index_cast %136 : i32 to index
      %138 = memref.load %arg1[%137] : memref<1280xi32, #tpu.memory_space<smem>>
      %139 = arith.index_cast %138 : i32 to index
      %c0_52 = arith.constant 0 : index
      %140 = vector.load %arg2[%139, %c0_52] : memref<256x128xf32, #tpu.memory_space<vmem>>, vector<1x128xf32>
      %141 = arith.addf %135, %140 : vector<1x128xf32>
      %142 = arith.addi %0, %17 : i32
      %c4_i32_53 = arith.constant 4 : i32
      %143 = arith.addi %142, %c4_i32_53 : i32
      %c5_i32_54 = arith.constant 5 : i32
      %144 = arith.muli %143, %c5_i32_54 : i32
      %145 = arith.index_cast %144 : i32 to index
      %146 = memref.load %arg1[%145] : memref<1280xi32, #tpu.memory_space<smem>>
      %147 = arith.index_cast %146 : i32 to index
      %c0_55 = arith.constant 0 : index
      %148 = vector.load %arg2[%147, %c0_55] : memref<256x128xf32, #tpu.memory_space<vmem>>, vector<1x128xf32>
      %c1_i32_56 = arith.constant 1 : i32
      %149 = arith.addi %144, %c1_i32_56 : i32
      %150 = arith.index_cast %149 : i32 to index
      %151 = memref.load %arg1[%150] : memref<1280xi32, #tpu.memory_space<smem>>
      %152 = arith.index_cast %151 : i32 to index
      %c0_57 = arith.constant 0 : index
      %153 = vector.load %arg2[%152, %c0_57] : memref<256x128xf32, #tpu.memory_space<vmem>>, vector<1x128xf32>
      %154 = arith.addf %148, %153 : vector<1x128xf32>
      %c2_i32_58 = arith.constant 2 : i32
      %155 = arith.addi %144, %c2_i32_58 : i32
      %156 = arith.index_cast %155 : i32 to index
      %157 = memref.load %arg1[%156] : memref<1280xi32, #tpu.memory_space<smem>>
      %158 = arith.index_cast %157 : i32 to index
      %c0_59 = arith.constant 0 : index
      %159 = vector.load %arg2[%158, %c0_59] : memref<256x128xf32, #tpu.memory_space<vmem>>, vector<1x128xf32>
      %160 = arith.addf %154, %159 : vector<1x128xf32>
      %c3_i32_60 = arith.constant 3 : i32
      %161 = arith.addi %144, %c3_i32_60 : i32
      %162 = arith.index_cast %161 : i32 to index
      %163 = memref.load %arg1[%162] : memref<1280xi32, #tpu.memory_space<smem>>
      %164 = arith.index_cast %163 : i32 to index
      %c0_61 = arith.constant 0 : index
      %165 = vector.load %arg2[%164, %c0_61] : memref<256x128xf32, #tpu.memory_space<vmem>>, vector<1x128xf32>
      %166 = arith.addf %160, %165 : vector<1x128xf32>
      %c4_i32_62 = arith.constant 4 : i32
      %167 = arith.addi %144, %c4_i32_62 : i32
      %168 = arith.index_cast %167 : i32 to index
      %169 = memref.load %arg1[%168] : memref<1280xi32, #tpu.memory_space<smem>>
      %170 = arith.index_cast %169 : i32 to index
      %c0_63 = arith.constant 0 : index
      %171 = vector.load %arg2[%170, %c0_63] : memref<256x128xf32, #tpu.memory_space<vmem>>, vector<1x128xf32>
      %172 = arith.addf %166, %171 : vector<1x128xf32>
      %173 = arith.addi %0, %17 : i32
      %c5_i32_64 = arith.constant 5 : i32
      %174 = arith.addi %173, %c5_i32_64 : i32
      %c5_i32_65 = arith.constant 5 : i32
      %175 = arith.muli %174, %c5_i32_65 : i32
      %176 = arith.index_cast %175 : i32 to index
      %177 = memref.load %arg1[%176] : memref<1280xi32, #tpu.memory_space<smem>>
      %178 = arith.index_cast %177 : i32 to index
      %c0_66 = arith.constant 0 : index
      %179 = vector.load %arg2[%178, %c0_66] : memref<256x128xf32, #tpu.memory_space<vmem>>, vector<1x128xf32>
      %c1_i32_67 = arith.constant 1 : i32
      %180 = arith.addi %175, %c1_i32_67 : i32
      %181 = arith.index_cast %180 : i32 to index
      %182 = memref.load %arg1[%181] : memref<1280xi32, #tpu.memory_space<smem>>
      %183 = arith.index_cast %182 : i32 to index
      %c0_68 = arith.constant 0 : index
      %184 = vector.load %arg2[%183, %c0_68] : memref<256x128xf32, #tpu.memory_space<vmem>>, vector<1x128xf32>
      %185 = arith.addf %179, %184 : vector<1x128xf32>
      %c2_i32_69 = arith.constant 2 : i32
      %186 = arith.addi %175, %c2_i32_69 : i32
      %187 = arith.index_cast %186 : i32 to index
      %188 = memref.load %arg1[%187] : memref<1280xi32, #tpu.memory_space<smem>>
      %189 = arith.index_cast %188 : i32 to index
      %c0_70 = arith.constant 0 : index
      %190 = vector.load %arg2[%189, %c0_70] : memref<256x128xf32, #tpu.memory_space<vmem>>, vector<1x128xf32>
      %191 = arith.addf %185, %190 : vector<1x128xf32>
      %c3_i32_71 = arith.constant 3 : i32
      %192 = arith.addi %175, %c3_i32_71 : i32
      %193 = arith.index_cast %192 : i32 to index
      %194 = memref.load %arg1[%193] : memref<1280xi32, #tpu.memory_space<smem>>
      %195 = arith.index_cast %194 : i32 to index
      %c0_72 = arith.constant 0 : index
      %196 = vector.load %arg2[%195, %c0_72] : memref<256x128xf32, #tpu.memory_space<vmem>>, vector<1x128xf32>
      %197 = arith.addf %191, %196 : vector<1x128xf32>
      %c4_i32_73 = arith.constant 4 : i32
      %198 = arith.addi %175, %c4_i32_73 : i32
      %199 = arith.index_cast %198 : i32 to index
      %200 = memref.load %arg1[%199] : memref<1280xi32, #tpu.memory_space<smem>>
      %201 = arith.index_cast %200 : i32 to index
      %c0_74 = arith.constant 0 : index
      %202 = vector.load %arg2[%201, %c0_74] : memref<256x128xf32, #tpu.memory_space<vmem>>, vector<1x128xf32>
      %203 = arith.addf %197, %202 : vector<1x128xf32>
      %204 = arith.addi %0, %17 : i32
      %c6_i32 = arith.constant 6 : i32
      %205 = arith.addi %204, %c6_i32 : i32
      %c5_i32_75 = arith.constant 5 : i32
      %206 = arith.muli %205, %c5_i32_75 : i32
      %207 = arith.index_cast %206 : i32 to index
      %208 = memref.load %arg1[%207] : memref<1280xi32, #tpu.memory_space<smem>>
      %209 = arith.index_cast %208 : i32 to index
      %c0_76 = arith.constant 0 : index
      %210 = vector.load %arg2[%209, %c0_76] : memref<256x128xf32, #tpu.memory_space<vmem>>, vector<1x128xf32>
      %c1_i32_77 = arith.constant 1 : i32
      %211 = arith.addi %206, %c1_i32_77 : i32
      %212 = arith.index_cast %211 : i32 to index
      %213 = memref.load %arg1[%212] : memref<1280xi32, #tpu.memory_space<smem>>
      %214 = arith.index_cast %213 : i32 to index
      %c0_78 = arith.constant 0 : index
      %215 = vector.load %arg2[%214, %c0_78] : memref<256x128xf32, #tpu.memory_space<vmem>>, vector<1x128xf32>
      %216 = arith.addf %210, %215 : vector<1x128xf32>
      %c2_i32_79 = arith.constant 2 : i32
      %217 = arith.addi %206, %c2_i32_79 : i32
      %218 = arith.index_cast %217 : i32 to index
      %219 = memref.load %arg1[%218] : memref<1280xi32, #tpu.memory_space<smem>>
      %220 = arith.index_cast %219 : i32 to index
      %c0_80 = arith.constant 0 : index
      %221 = vector.load %arg2[%220, %c0_80] : memref<256x128xf32, #tpu.memory_space<vmem>>, vector<1x128xf32>
      %222 = arith.addf %216, %221 : vector<1x128xf32>
      %c3_i32_81 = arith.constant 3 : i32
      %223 = arith.addi %206, %c3_i32_81 : i32
      %224 = arith.index_cast %223 : i32 to index
      %225 = memref.load %arg1[%224] : memref<1280xi32, #tpu.memory_space<smem>>
      %226 = arith.index_cast %225 : i32 to index
      %c0_82 = arith.constant 0 : index
      %227 = vector.load %arg2[%226, %c0_82] : memref<256x128xf32, #tpu.memory_space<vmem>>, vector<1x128xf32>
      %228 = arith.addf %222, %227 : vector<1x128xf32>
      %c4_i32_83 = arith.constant 4 : i32
      %229 = arith.addi %206, %c4_i32_83 : i32
      %230 = arith.index_cast %229 : i32 to index
      %231 = memref.load %arg1[%230] : memref<1280xi32, #tpu.memory_space<smem>>
      %232 = arith.index_cast %231 : i32 to index
      %c0_84 = arith.constant 0 : index
      %233 = vector.load %arg2[%232, %c0_84] : memref<256x128xf32, #tpu.memory_space<vmem>>, vector<1x128xf32>
      %234 = arith.addf %228, %233 : vector<1x128xf32>
      %235 = arith.addi %0, %17 : i32
      %c7_i32 = arith.constant 7 : i32
      %236 = arith.addi %235, %c7_i32 : i32
      %c5_i32_85 = arith.constant 5 : i32
      %237 = arith.muli %236, %c5_i32_85 : i32
      %238 = arith.index_cast %237 : i32 to index
      %239 = memref.load %arg1[%238] : memref<1280xi32, #tpu.memory_space<smem>>
      %240 = arith.index_cast %239 : i32 to index
      %c0_86 = arith.constant 0 : index
      %241 = vector.load %arg2[%240, %c0_86] : memref<256x128xf32, #tpu.memory_space<vmem>>, vector<1x128xf32>
      %c1_i32_87 = arith.constant 1 : i32
      %242 = arith.addi %237, %c1_i32_87 : i32
      %243 = arith.index_cast %242 : i32 to index
      %244 = memref.load %arg1[%243] : memref<1280xi32, #tpu.memory_space<smem>>
      %245 = arith.index_cast %244 : i32 to index
      %c0_88 = arith.constant 0 : index
      %246 = vector.load %arg2[%245, %c0_88] : memref<256x128xf32, #tpu.memory_space<vmem>>, vector<1x128xf32>
      %247 = arith.addf %241, %246 : vector<1x128xf32>
      %c2_i32_89 = arith.constant 2 : i32
      %248 = arith.addi %237, %c2_i32_89 : i32
      %249 = arith.index_cast %248 : i32 to index
      %250 = memref.load %arg1[%249] : memref<1280xi32, #tpu.memory_space<smem>>
      %251 = arith.index_cast %250 : i32 to index
      %c0_90 = arith.constant 0 : index
      %252 = vector.load %arg2[%251, %c0_90] : memref<256x128xf32, #tpu.memory_space<vmem>>, vector<1x128xf32>
      %253 = arith.addf %247, %252 : vector<1x128xf32>
      %c3_i32_91 = arith.constant 3 : i32
      %254 = arith.addi %237, %c3_i32_91 : i32
      %255 = arith.index_cast %254 : i32 to index
      %256 = memref.load %arg1[%255] : memref<1280xi32, #tpu.memory_space<smem>>
      %257 = arith.index_cast %256 : i32 to index
      %c0_92 = arith.constant 0 : index
      %258 = vector.load %arg2[%257, %c0_92] : memref<256x128xf32, #tpu.memory_space<vmem>>, vector<1x128xf32>
      %259 = arith.addf %253, %258 : vector<1x128xf32>
      %c4_i32_93 = arith.constant 4 : i32
      %260 = arith.addi %237, %c4_i32_93 : i32
      %261 = arith.index_cast %260 : i32 to index
      %262 = memref.load %arg1[%261] : memref<1280xi32, #tpu.memory_space<smem>>
      %263 = arith.index_cast %262 : i32 to index
      %c0_94 = arith.constant 0 : index
      %264 = vector.load %arg2[%263, %c0_94] : memref<256x128xf32, #tpu.memory_space<vmem>>, vector<1x128xf32>
      %265 = arith.addf %259, %264 : vector<1x128xf32>
      %266 = tpu.concatenate %48, %79, %110, %141, %172, %203, %234, %265 in 0 : vector<1x128xf32>, vector<1x128xf32>, vector<1x128xf32>, vector<1x128xf32>, vector<1x128xf32>, vector<1x128xf32>, vector<1x128xf32>, vector<1x128xf32> -> vector<8x128xf32>
      %267 = vector.broadcast %cst : f32 to vector<8x128xf32>
      %268 = arith.mulf %266, %267 : vector<8x128xf32>
      %269 = arith.index_cast %17 : i32 to index
      %c0_95 = arith.constant 0 : index
      %270 = vector.load %arg6[%269, %c0_95] : memref<128x128xf32, #tpu.memory_space<vmem>>, vector<8x128xf32>
      tpu.vector_store %arg6[%269, %c0_95], %268 {strides = array<i32>} : memref<128x128xf32, #tpu.memory_space<vmem>>, vector<8x128xf32>,
    }
    %c16_i32_0 = arith.constant 16 : i32
    %2 = tpu.assume_multiple %0, 128 : i32
    %3 = arith.index_cast %2 : i32 to index
    %c0 = arith.constant 0 : index
    %4 = vector.load %arg2[%3, %c0] : memref<256x128xf32, #tpu.memory_space<vmem>>, vector<128x128xf32>
    %5 = arith.truncf %4 : vector<128x128xf32> to vector<128x128xbf16>
    %c0_1 = arith.constant 0 : index
    %c0_2 = arith.constant 0 : index
    %6 = vector.load %arg3[%c0_1, %c0_2] : memref<128x128xbf16, #tpu.memory_space<vmem>>, vector<128x128xbf16>
    %cst_3 = arith.constant dense<0.000000e+00> : vector<128x128xf32>
    %7 = tpu.matmul %5, %6, %cst_3 {dimension_numbers = #tpu.dot_dimension_numbers<[1], [0], [0], [1], [0, 0, 1, 1], [], []>} : vector<128x128xbf16>, vector<128x128xbf16>, vector<128x128xf32> -> vector<128x128xf32>
    %c0_4 = arith.constant 0 : index
    %c0_5 = arith.constant 0 : index
    %8 = vector.load %arg6[%c0_4, %c0_5] : memref<128x128xf32, #tpu.memory_space<vmem>>, vector<128x128xf32>
    %9 = arith.truncf %8 : vector<128x128xf32> to vector<128x128xbf16>
    %c0_6 = arith.constant 0 : index
    %c0_7 = arith.constant 0 : index
    %10 = vector.load %arg4[%c0_6, %c0_7] : memref<128x128xbf16, #tpu.memory_space<vmem>>, vector<128x128xbf16>
    %cst_8 = arith.constant dense<0.000000e+00> : vector<128x128xf32>
    %11 = tpu.matmul %9, %10, %cst_8 {dimension_numbers = #tpu.dot_dimension_numbers<[1], [0], [0], [1], [0, 0, 1, 1], [], []>} : vector<128x128xbf16>, vector<128x128xbf16>, vector<128x128xf32> -> vector<128x128xf32>
    %12 = arith.addf %7, %11 : vector<128x128xf32>
    %c0_9 = arith.constant 0 : index
    %c0_10 = arith.constant 0 : index
    %13 = vector.load %arg5[%c0_9, %c0_10] : memref<128x128xf32, #tpu.memory_space<vmem>>, vector<128x128xf32>
    tpu.vector_store %arg5[%c0_9, %c0_10], %12 {strides = array<i32>} : memref<128x128xf32, #tpu.memory_space<vmem>>, vector<128x128xf32>,
    return
  }
  func.func @transform_0(%arg0: i32, %arg1: memref<1280xi32, #tpu.memory_space<smem>>) -> (i32, i32) {
    %c0_i32 = arith.constant 0 : i32
    %c0_i32_0 = arith.constant 0 : i32
    %c0_i32_1 = arith.constant 0 : i32
    return %c0_i32, %c0_i32_0 : i32, i32
  }
  func.func @transform_1(%arg0: i32, %arg1: memref<1280xi32, #tpu.memory_space<smem>>) -> (i32, i32) {
    %c0_i32 = arith.constant 0 : i32
    %c0_i32_0 = arith.constant 0 : i32
    %c0_i32_1 = arith.constant 0 : i32
    return %c0_i32, %c0_i32_0 : i32, i32
  }
  func.func @transform_2(%arg0: i32, %arg1: memref<1280xi32, #tpu.memory_space<smem>>) -> (i32, i32) {
    %c0_i32 = arith.constant 0 : i32
    %c0_i32_0 = arith.constant 0 : i32
    %c0_i32_1 = arith.constant 0 : i32
    return %c0_i32, %c0_i32_0 : i32, i32
  }
  func.func @transform_3(%arg0: i32, %arg1: memref<1280xi32, #tpu.memory_space<smem>>) -> (i32, i32) {
    %c0_i32 = arith.constant 0 : i32
    %c0_i32_0 = arith.constant 0 : i32
    return %arg0, %c0_i32 : i32, i32
  }
}

</mosaic_0001>

<bundles_post_ra>
// kernel: tpu_custom_call.1
= control target key start
LH: loop header
LB: loop body
LE: loop exit
PB: predicated region body
PF: predicated region fallthrough
CT: control target
= control target key end

     0   :  { %s1843_s0 = inlined_call_operand.hbm [shape: s32[1280], index: 0, kind: input, shape index: {}]   ;;  %s1844_s1 = inlined_call_operand.hbm [shape: f32[256,128], index: 1, kind: input, shape index: {}]   ;;  %s1845_s2 = inlined_call_operand.hbm [shape: bf16[128,128], index: 2, kind: input, shape index: {}]   ;;  %s1846_s3 = inlined_call_operand.hbm [shape: bf16[128,128], index: 3, kind: input, shape index: {}]   ;;  %s1847_s4 = inlined_call_operand.hbm [shape: f32[256,128], index: 4, kind: output, shape index: {}]  }
   0x1   :  { %1869 = sst [smem:[#allocation30_spill]] %s1844_s1  ;;  %s1224_s17 = scalar_lea.hbm %s1843_s0, 160 }
   0x2   :  { %1870 = sst [smem:[#allocation31_spill]] %s1845_s2  ;;  %p1225_p0 = scmp.ne.s32.totalorder %s1843_s0, %s1224_s17 }
   0x3   :  { %1871 = sst [smem:[#allocation32_spill]] %s1846_s3  ;;  %s1226_s22 = scalar_lea.hbm %s1843_s0, 256 }
   0x4   :  { %1872 = sst [smem:[#allocation33_spill]] %s1847_s4  ;;  %p1227_p1 = scmp.lt.u32.totalorder %s1226_s22, %s1224_s17 }
   0x5   :  { %p1228_p2 = scmp.lt.u32.totalorder %s1224_s17, %s1843_s0 }
   0x7   :  { %p1229_p3 = por %p1228_p2, %p1227_p1 }
   0x9   :  { %p1230_p4 = pnand %p1229_p3, %p1225_p0 }
   0xb   :  { %1233 = shalt.err (!%p1230_p4)  }
   0xc   :  { %s1400_s25 = smov [#allocation4]  }
   0xd   :  { %10 = dma.hbm_to_smem %s1843_s0, 160, %s1400_s25, [#allocation3] }
   0xe   :  { %1366 = dma.done.wait [#allocation3], 160 }
   0xf   :  { %1367 = vsyncadd [#allocation3], 4294967136 }
  0x10   :  { %12 = sfence }
  0x11   :  { %13 = vsyncpa [#allocation6], 0 }
  0x12   :  { %14 = vsyncpa [#allocation9], 0 }
  0x13   :  { %15 = vsyncpa [#allocation7], 0 }
  0x14   :  { %17 = vsyncpa [#allocation7 + $0x1], 0  ;;  %s1451_s28 = smov 0   ;;  %s1453_s29 = smov 0  }
  0x15   :  { %s1455_s30 = smov 0   ;;  %s1457_s5 = smov 0  }
  0x16 LB: > { %1873 = sst [smem:[#allocation16_spill]] %s1382_s28  ;;  %s1472_s0 = sadd.s32 4294967295, %s1394_s5   ;;  %s1394_s5 = sphi %s1457_s5, %s1920_s5   ;;  %s1390_s30 = sphi %s1455_s30, %s1923_s30   ;;  %s1386_s29 = sphi %s1453_s29, %s1922_s29   ;;  %s1382_s28 = sphi %s1451_s28, %s1921_s28  }
  0x17   : > { %1874 = sst [smem:[#allocation17_spill]] %s1386_s29  ;;  %s977_s6 = sadd.s32 4294967294, %s1394_s5  }
  0x18   : > { %1875 = sst [smem:[#allocation18_spill]] %s1390_s30  ;;  %s1476_s7 = sadd.s32 1, %s1394_s5  }
  0x19   : > { %1876 = sst [smem:[#allocation19_spill]] %s1394_s5  ;;  %s93_s8 = sadd.s32 1, %s1390_s30 }
  0x1a   : > { %1877 = sst [smem:[#allocation20_spill]] %s1472_s0  ;;  %s90_s9 = ssub.s32 %s1394_s5, %s1476_s7 }
  0x1b   : > { %1878 = sst [smem:[#allocation21_spill]] %s1476_s7  ;;  %p103_p5 = scmp.ne.s32.totalorder %s1390_s30, %s1386_s29 }
  0x1c   : > { %p91_p6 = scmp.eq.s32.totalorder %s90_s9, 0  ;;  %p104_p7 = scmp.eq.s32.totalorder %s1472_s0, 1 }
  0x1d   : > { %p109_p8 = scmp.ne.s32.totalorder %s1386_s29, %s1382_s28  ;;  %p110_p9 = scmp.eq.s32.totalorder %s977_s6, 1 }
  0x1e   : > { %s1487_s10 = scalar_select %p91_p6, %s1390_s30, %s93_s8  }
  0x1f   : > { %p1489_p10 = por %p104_p7, %p103_p5  ;;  %p1493_p11 = por %p110_p9, %p109_p8 }
  0x20   : > { %1879 = sst [smem:[#allocation22_spill]] %s1487_s10  ;;  %p978_p12 = scmp.ge.s32.totalorder %s1394_s5, 1 }
  0x21   : > { %s1880_s11 = scalar_select %p1489_p10, 1, 0 }
  0x22   : > { %s1882_s12 = scalar_select %p1493_p11, 1, 0 }
  0x23   : > { %1881 = sst [smem:[#allocation23_spill]] %s1880_s11  ;;  %p117_p13 = scmp.lt.s32.totalorder %s1394_s5, 3 }
  0x24   : > { %1883 = sst [smem:[#allocation24_spill]] %s1882_s12  ;;  %p1848_p0 = scmp.eq.s32.totalorder %s1472_s0, 0 }
  0x25   : > { %p1500_p1 = pnand %p978_p12, %p117_p13  ;;  %s1401_s14 = smov [#allocation8]  }
  0x26   : > { %s142_s15 = sshll.u32 %s1401_s14, 4  ;;  %s1402_s17 = smov [#allocation5]   ;;  %s143_s15 = int_to_ptr.vmem [resolvable:$true] %s142_s15 }
  0x27   : > { %s1884_s13 = scalar_select %p1500_p1, 1, 0 }
  0x28   : > { %p1137_p2 = pneg %p1500_p1  ;;  %s129_s18 = sshll.u32 %s1402_s17, 4  ;;  %s1512_s18 = int_to_ptr.vmem [resolvable:$true] %s129_s18 }
  0x29   : > { %s1886_s2 = sld [smem:[#allocation31_spill]] }
  0x2a   : > { %p1508_p3 = pnand %p1848_p0, %p1137_p2 }
  0x2c   : > { %p1522_p5 = pneg %p1508_p3 }
  0x2f   : > { %s1234_s21 = scalar_lea.hbm %s1886_s2, 1024 }
  0x30   : > { %p1235_p4 = scmp.ne.s32.totalorder %s1886_s2, %s1234_s21  ;;  %p1241_p8 = scmp.lt.u32.totalorder %s1234_s21, %s1886_s2 }
  0x32   : > { %p1237_p6 = pnand %p1522_p5, %p1235_p4 }
  0x34   : > { %p1238_p7 = pneg %p1237_p6 }
  0x36   : > { %p1243_p9 = pnand %p1241_p8, %p1238_p7 }
  0x38   : > { %1246 = shalt.err (!%p1243_p9)
}
  0x39   : > { %s1247_s27 = scalar_lea.vmem %s143_s15, 1024  ;;  %p1255_p0 = scmp.lt.s32.totalorder %s143_s15, %s143_s15 }
  0x3a   : > { %p1248_p12 = scmp.ne.s32.totalorder %s143_s15, %s1247_s27  ;;  %p1256_p11 = scmp.lt.s32.totalorder %s1247_s27, %s1247_s27 }
  0x3c   : > { %p1250_p13 = pnand %p1248_p12, %p1522_p5  ;;  %p1257_p10 = por %p1256_p11, %p1255_p0 }
  0x3e   : > { %p1251_p2 = pneg %p1250_p13 }
  0x40   : > { %p1258_p1 = pnand %p1257_p10, %p1251_p2 }
  0x42   : > { %1261 = shalt.err (!%p1258_p1)
}
  0x43   : > { %s1851_s6 = smov 64   ;;  %s1404_s8 = smov 4  }
  0x44   : > { %1143 = dma.hbm_to_vmem [thread:$0]  (!%p1508_p3), %s1886_s2, 1024, %s143_s15, [#allocation9], %s1851_s6, %s1851_s6, %s1404_s8  }
  0x45   : > { %s1888_s1 = sld [smem:[#allocation30_spill]] }
  0x4b   : > { %s1262_s20 = scalar_lea.hbm %s1888_s1, 4096 }
  0x4c   : > { %p1263_p10 = scmp.ne.s32.totalorder %s1888_s1, %s1262_s20  ;;  %p1269_p1 = scmp.lt.u32.totalorder %s1262_s20, %s1888_s1 }
  0x4e   : > { %p1265_p11 = pnand %p1263_p10, %p1522_p5 }
  0x50   : > { %p1266_p0 = pneg %p1265_p11 }
  0x52   : > { %p1271_p4 = pnand %p1269_p1, %p1266_p0 }
  0x54   : > { %1274 = shalt.err (!%p1271_p4)
}
  0x55   : > { %s1275_s15 = scalar_lea.vmem %s1512_s18, 4096  ;;  %p1283_p9 = scmp.lt.s32.totalorder %s1512_s18, %s1512_s18 }
  0x56   : > { %p1276_p6 = scmp.ne.s32.totalorder %s1512_s18, %s1275_s15  ;;  %p1284_p12 = scmp.lt.s32.totalorder %s1275_s15, %s1275_s15 }
  0x58   : > { %p1278_p7 = pnand %p1276_p6, %p1522_p5  ;;  %p1285_p13 = por %p1284_p12, %p1283_p9 }
  0x5a   : > { %p1279_p8 = pneg %p1278_p7 }
  0x5c   : > { %p1286_p2 = pnand %p1285_p13, %p1279_p8 }
  0x5e   : > { %1289 = shalt.err (!%p1286_p2)
}
  0x5f   : > { %s1405_s26 = smov 128   ;;  %s1406_s27 = smov 8  }
  0x60   : > { %1140 = dma.hbm_to_vmem [thread:$0]  (!%p1508_p3), %s1888_s1, 4096, %s1512_s18, [#allocation6], %s1405_s26, %s1405_s26, %s1406_s27  }
  0x61   : > { %s1407_s17 = smov [#allocation10]   ;;  %s1889_s3 = sld [smem:[#allocation32_spill]] }
  0x62   : > { %s155_s19 = sshll.u32 %s1407_s17, 4  ;;  %s156_s19 = int_to_ptr.vmem [resolvable:$true] %s155_s19 }
  0x67   : > { %s1290_s22 = scalar_lea.hbm %s1889_s3, 1024 }
  0x68   : > { %p1291_p10 = scmp.ne.s32.totalorder %s1889_s3, %s1290_s22  ;;  %p1297_p1 = scmp.lt.u32.totalorder %s1290_s22, %s1889_s3 }
  0x6a   : > { %p1293_p11 = pnand %p1291_p10, %p1522_p5 }
  0x6c   : > { %p1294_p0 = pneg %p1293_p11 }
  0x6e   : > { %p1299_p4 = pnand %p1297_p1, %p1294_p0 }
  0x70   : > { %1302 = shalt.err (!%p1299_p4)
}
  0x71   : > { %s1303_s18 = scalar_lea.vmem %s156_s19, 1024  ;;  %p1311_p9 = scmp.lt.s32.totalorder %s156_s19, %s156_s19 }
  0x72   : > { %p1304_p6 = scmp.ne.s32.totalorder %s156_s19, %s1303_s18  ;;  %p1312_p12 = scmp.lt.s32.totalorder %s1303_s18, %s1303_s18 }
  0x74   : > { %p1306_p7 = pnand %p1304_p6, %p1522_p5  ;;  %p1313_p13 = por %p1312_p12, %p1311_p9 }
  0x76   : > { %p1307_p8 = pneg %p1306_p7 }
  0x78   : > { %p1314_p2 = pnand %p1313_p13, %p1307_p8 }
  0x7a   : > { %1317 = shalt.err (!%p1314_p2)
}
  0x7b   : > { %s1890_s26 = smov 64   ;;  %p1891_p10 = scmp.ne.s32.totalorder %s1884_s13, 0 }
  0x7c   : > { %1146 = dma.hbm_to_vmem [thread:$0]  (!%p1508_p3), %s1889_s3, 1024, %s156_s19, [#allocation9], %s1890_s26, %s1890_s26, %s1404_s8  }
  0x7d   : > { %171 = sbr.rel (%p1891_p10) target bundleno = 512 (0x200), region = 32 }
  0x84   : > { %p1892_p5 = scmp.eq.s32.totalorder %s1472_s0, 0 }
  0x86   : > { %1369 = dma.done.wait (%p1892_p5), [#allocation6], 4096   ;;  %p1893_p11 = pmov %p1892_p5 }
  0x87   : > { %p1894_p0 = pmov %p1892_p5 }
  0x88   : > { %1371 = vsyncadd (%p1893_p11), [#allocation6], 4294963200 }
  0x89   : > { %1373 = dma.done.wait (%p1894_p0), [#allocation9], 2048   ;;  %p1895_p1 = pmov %p1894_p0 }
  0x8a   : > { %s1852_s16 = sand.u32 1, %s1386_s29   ;;  %s1601_s9 = smov 0  }
  0x8b   : > { %1375 = vsyncadd (%p1895_p1), [#allocation9], 4294965248  ;;  %s986_s13 = sshll.u32 %s1852_s16, 7 }
  0x8c   : > { %s1599_s8 = scalar_lea.vmem [#allocation11], %s986_s13 }
  0x8d   : > { %1896 = sst [smem:[#allocation25_spill]] %s1599_s8 }
  0x8e LB: >> { %s1897_s0 = sld [smem:[#allocation20_spill]]  ;;  %1898 = sst [smem:[#allocation26_spill]] %s1398_s9  ;;  %vm429_vm0 = vcmask 1040384   ;;  %vm431_vm1 = vcmask 1041408   ;;  %vm433_vm2 = vcmask 1042432   ;;  %vm435_vm3 = vcmask 1043456   ;;  %s1398_s9 = sphi %s1601_s9, %s206_s9  }
  0x8f   : >> { %s1853_s14 = sshll.u32 %s1398_s9, 3  ;;  %vm437_vm4 = vcmask 1044480   ;;  %vm439_vm5 = vcmask 1045504   ;;  %vm441_vm6 = vcmask 1046528  }
  0x94   : >> { %s1899_s24 = sshll.u32 %s1897_s0, 7 }
  0x95   : >> { %s1611_s17 = sadd.s32 %s1853_s14, %s1899_s24 }
  0x96   : >> { %s209_s19 = smul.u32 5, %s1611_s17  ;;  %s233_s20 = sadd.s32 1, %s1611_s17 }
  0x97   : >> { %s234_s21 = smul.u32 5, %s233_s20  ;;  %s258_s20 = sadd.s32 2, %s1611_s17 }
  0x98   : >> { %s1615_s22 = sld [smem:[#allocation4 + %s209_s19]]  ;;  %s213_s23 = sadd.s32 1, %s209_s19 }
  0x99   : >> { %s1617_s25 = sld [smem:[#allocation4 + %s213_s23]]  ;;  %s218_s15 = sadd.s32 2, %s209_s19 }
  0x9a   : >> { %s1619_s18 = sld [smem:[#allocation4 + %s218_s15]]  ;;  %s223_s26 = sadd.s32 3, %s209_s19 }
  0x9b   : >> { %s1621_s6 = sld [smem:[#allocation4 + %s223_s26]]  ;;  %s228_s27 = sadd.s32 4, %s209_s19 }
  0x9c   : >> { %s1623_s13 = sld [smem:[#allocation4 + %s228_s27]]  ;;  %s238_s24 = sadd.s32 1, %s234_s21 }
  0x9d   : >> { %s1625_s16 = sld [smem:[#allocation4 + %s234_s21]]  ;;  %s243_s14 = sadd.s32 2, %s234_s21 }
  0x9e   : >> { %s1627_s1 = sld [smem:[#allocation4 + %s238_s24]]  ;;  %s248_s23 = sadd.s32 3, %s234_s21 }
  0x9f   : >> { %s1630_s2 = sld [smem:[#allocation4 + %s243_s14]]  ;;  %s253_s3 = sadd.s32 4, %s234_s21 }
  0xa0   : >> { %s1632_s15 = sld [smem:[#allocation4 + %s248_s23]]  ;;  %s259_s26 = smul.u32 5, %s258_s20 }
  0xa1   : >> { %s1634_s10 = sld [smem:[#allocation4 + %s253_s3]]  ;;  %s283_s23 = sadd.s32 3, %s1611_s17 }
  0xa2   : >> { %1900 = sst [smem:[#allocation27_spill]] %s1623_s13  ;;  %s263_s27 = sadd.s32 1, %s259_s26 }
  0xa3   : >> { %s1636_s19 = sld [smem:[#allocation4 + %s259_s26]]  ;;  %s268_s30 = sadd.s32 2, %s259_s26 }
  0xa4   : >> { %s1638_s7 = sld [smem:[#allocation4 + %s263_s27]]  ;;  %s273_s12 = sadd.s32 3, %s259_s26 }
  0xa5   : >> { %s1640_s24 = sld [smem:[#allocation4 + %s268_s30]]  ;;  %s278_s14 = sadd.s32 4, %s259_s26 }
  0xa6   : >> { %s1642_s28 = sld [smem:[#allocation4 + %s273_s12]]  ;;  %s284_s4 = smul.u32 5, %s283_s23 }
  0xa7   : >> { %s1644_s5 = sld [smem:[#allocation4 + %s278_s14]]  ;;  %s308_s21 = sadd.s32 4, %s1611_s17 }
  0xa8   : >> { %s1648_s20 = sld [smem:[#allocation4 + %s284_s4]]  ;;  %s309_s3 = smul.u32 5, %s308_s21 }
  0xa9   : >> { %s288_s11 = sadd.s32 1, %s284_s4  ;;  %s293_s27 = sadd.s32 2, %s284_s4 }
  0xaa   : >> { %s1650_s29 = sld [smem:[#allocation4 + %s288_s11]]  ;;  %s298_s30 = sadd.s32 3, %s284_s4 }
  0xab   : >> { %s1652_s8 = sld [smem:[#allocation4 + %s293_s27]]  ;;  %s303_s26 = sadd.s32 4, %s284_s4 }
  0xac   : >> { %s1654_s12 = sld [smem:[#allocation4 + %s298_s30]]  ;;  %s313_s0 = sadd.s32 1, %s309_s3 }
  0xad   : >> { %1901 = sst [smem:[#allocation28_spill]] %s1644_s5  ;;  %s318_s21 = sadd.s32 2, %s309_s3 }
  0xae   : >> { %s1656_s14 = sld [smem:[#allocation4 + %s309_s3]]  ;;  %s323_s13 = sadd.s32 3, %s309_s3 }
  0xaf   : >> { %s1658_s23 = sld [smem:[#allocation4 + %s303_s26]]  ;;  %s236_s27 = scalar_lea.vmem [#allocation5], %s1625_s16 }
  0xb0   : >> { %s1660_s9 = sld [smem:[#allocation4 + %s313_s0]]  ;;  %v237_v0 = vld [vmem:[%s236_s27] sm:$0x1]  ;;  %s240_s30 = scalar_lea.vmem [#allocation5], %s1627_s1 }
  0xb1   : >> { %s1662_s11 = sld [smem:[#allocation4 + %s318_s21]]  ;;  %v241_v1 = vld [vmem:[%s240_s30] sm:$0x1]  ;;  %s328_s5 = sadd.s32 4, %s309_s3 }
  0xb2   : >> { %s1666_s4 = sld [smem:[#allocation4 + %s323_s13]]  ;;  %s211_s26 = scalar_lea.vmem [#allocation5], %s1615_s22  ;;  %v242_v3 = vadd.f32 %v241_v1, %v237_v0 }
  0xb3   : >> { %v212_v2 = vld [vmem:[%s211_s26] sm:$0x1]  ;;  %s333_s0 = sadd.s32 5, %s1611_s17  ;;  %s261_s21 = scalar_lea.vmem [#allocation5], %s1636_s19 }
  0xb4   : >> { %v262_v4 = vld [vmem:[%s261_s21] sm:$0x1]  ;;  %s265_s16 = scalar_lea.vmem [#allocation5], %s1638_s7  ;;  %s1674_s27 = smul.u32 5, %s333_s0 }
  0xb5   : >> { %1902 = sst [smem:[#allocation29_spill]] %s1658_s23  ;;  %v266_v5 = vld [vmem:[%s265_s16] sm:$0x1]  ;;  %s215_s1 = scalar_lea.vmem [#allocation5], %s1617_s25 }
  0xb6   : >> { %s1669_s23 = sld [smem:[#allocation4 + %s328_s5]]  ;;  %v216_v6 = vld [vmem:[%s215_s1] sm:$0x1]  ;;  %s245_s22 = scalar_lea.vmem [#allocation5], %s1630_s2  ;;  %v267_v8 = vadd.f32 %v266_v5, %v262_v4 }
  0xb7   : >> { %v246_v7 = vld [vmem:[%s245_s22] sm:$0x1]  ;;  %s1679_s5 = sld [smem:[#allocation4 + %s1674_s27]]  ;;  %s338_s13 = sadd.s32 1, %s1674_s27  ;;  %v217_v11 = vadd.f32 %v216_v6, %v212_v2 }
  0xb8   : >> { %s286_s19 = scalar_lea.vmem [#allocation5], %s1648_s20  ;;  %s290_s7 = scalar_lea.vmem [#allocation5], %s1650_s29  ;;  %v247_v12 = vadd.f32 %v246_v7, %v242_v3 }
  0xb9   : >> { %v287_v9 = vld [vmem:[%s286_s19] sm:$0x1]  ;;  %s1684_s3 = sld [smem:[#allocation4 + %s338_s13]]  ;;  %s358_s25 = sadd.s32 6, %s1611_s17 }
  0xba   : >> { %v291_v10 = vld [vmem:[%s290_s7] sm:$0x1]  ;;  %s270_s2 = scalar_lea.vmem [#allocation5], %s1640_s24  ;;  %s343_s30 = sadd.s32 2, %s1674_s27 }
  0xbb   : >> { %v271_v13 = vld [vmem:[%s270_s2] sm:$0x1]  ;;  %s348_s26 = sadd.s32 3, %s1674_s27  ;;  %s220_s0 = scalar_lea.vmem [#allocation5], %s1619_s18  ;;  %v292_v16 = vadd.f32 %v291_v10, %v287_v9 }
  0xbc   : >> { %v221_v14 = vld [vmem:[%s220_s0] sm:$0x1]  ;;  %s250_s20 = scalar_lea.vmem [#allocation5], %s1632_s15  ;;  %s1692_s29 = sld [smem:[#allocation4 + %s343_s30]]  ;;  %v272_v19 = vadd.f32 %v271_v13, %v267_v8 }
  0xbd   : >> { %v251_v15 = vld [vmem:[%s250_s20] sm:$0x1]  ;;  %s311_s21 = scalar_lea.vmem [#allocation5], %s1656_s14  ;;  %s315_s16 = scalar_lea.vmem [#allocation5], %s1660_s9  ;;  %v222_v21 = vadd.f32 %v221_v14, %v217_v11 }
  0xbe   : >> { %v312_v17 = vld [vmem:[%s311_s21] sm:$0x1]  ;;  %s1696_s1 = sld [smem:[#allocation4 + %s348_s26]]  ;;  %s353_s24 = sadd.s32 4, %s1674_s27  ;;  %v252_v23 = vadd.f32 %v251_v15, %v247_v12 }
  0xbf   : >> { %v316_v18 = vld [vmem:[%s315_s16] sm:$0x1]  ;;  %s295_s22 = scalar_lea.vmem [#allocation5], %s1652_s8  ;;  %s1700_s18 = smul.u32 5, %s358_s25 }
  0xc0   : >> { %v296_v20 = vld [vmem:[%s295_s22] sm:$0x1]  ;;  %s225_s15 = scalar_lea.vmem [#allocation5], %s1621_s6  ;;  %s275_s9 = scalar_lea.vmem [#allocation5], %s1642_s28  ;;  %v317_v26 = vadd.f32 %v316_v18, %v312_v17 }
  0xc1   : >> { %v226_v22 = vld [vmem:[%s225_s15] sm:$0x1]  ;;  %s1704_s14 = sld [smem:[#allocation4 + %s353_s24]]  ;;  %s255_s27 = scalar_lea.vmem [#allocation5], %s1634_s10  ;;  %v297_v28 = vadd.f32 %v296_v20, %v292_v16 }
  0xc2   : >> { %v276_v24 = vld [vmem:[%s275_s9] sm:$0x1]  ;;  %s336_s8 = scalar_lea.vmem [#allocation5], %s1679_s5  ;;  %s1903_s13 = sld [smem:[#allocation28_spill]]  ;;  %v227_v33 = vadd.f32 %v226_v22, %v222_v21 }
  0xc3   : >> { %v256_v25 = vld [vmem:[%s255_s27] sm:$0x1]  ;;  %s1709_s19 = sld [smem:[#allocation4 + %s1700_s18]]  ;;  %s320_s7 = scalar_lea.vmem [#allocation5], %s1662_s11  ;;  %v277_v31 = vadd.f32 %v276_v24, %v272_v19 }
  0xc4   : >> { %v337_v27 = vld [vmem:[%s336_s8] sm:$0x1]  ;;  %s1904_s6 = sld [smem:[#allocation27_spill]]  ;;  %s340_s25 = scalar_lea.vmem [#allocation5], %s1684_s3  ;;  %v257_v34 = vadd.f32 %v256_v25, %v252_v23 }
  0xc5   : >> { %v321_v29 = vld [vmem:[%s320_s7] sm:$0x1]  ;;  %s363_s28 = sadd.s32 1, %s1700_s18  ;;  %s368_s2 = sadd.s32 2, %s1700_s18 }
  0xc6   : >> { %v341_v30 = vld [vmem:[%s340_s25] sm:$0x1]  ;;  %s300_s10 = scalar_lea.vmem [#allocation5], %s1654_s12  ;;  %s1716_s5 = sld [smem:[#allocation4 + %s363_s28]]  ;;  %v322_v38 = vadd.f32 %v321_v29, %v317_v26  ;;  %v409_v47 = vrot.slane %v257_v34, 7 }
  0xc7   : >> { %v301_v32 = vld [vmem:[%s300_s10] sm:$0x1]  ;;  %s1905_s11 = sld [smem:[#allocation29_spill]]  ;;  %v342_v36 = vadd.f32 %v341_v30, %v337_v27  ;;  %s383_s3 = sadd.s32 7, %s1611_s17 }
  0xc8   : >> { %s280_s30 = scalar_lea.vmem [#allocation5], %s1903_s13  ;;  %s1719_s26 = sld [smem:[#allocation4 + %s368_s2]]  ;;  %v302_v40 = vadd.f32 %v301_v32, %v297_v28 }
  0xc9   : >> { %v281_v35 = vld [vmem:[%s280_s30] sm:$0x1]  ;;  %s345_s20 = scalar_lea.vmem [#allocation5], %s1692_s29  ;;  %s373_s12 = sadd.s32 3, %s1700_s18 }
  0xca   : >> { %s230_s0 = scalar_lea.vmem [#allocation5], %s1904_s6  ;;  %v346_v39 = vld [vmem:[%s345_s20] sm:$0x1]  ;;  %s325_s21 = scalar_lea.vmem [#allocation5], %s1666_s4  ;;  %v282_v42 = vadd.f32 %v281_v35, %v277_v31 }
  0xcb   : >> { %v231_v37 = vld [vmem:[%s230_s0] sm:$0x1]  ;;  %s1726_s16 = sld [smem:[#allocation4 + %s373_s12]]  ;;  %s378_s24 = sadd.s32 4, %s1700_s18  ;;  %v347_v45 = vadd.f32 %v346_v39, %v342_v36 }
  0xcc   : >> { %v326_v41 = vld [vmem:[%s325_s21] sm:$0x1]  ;;  %s1730_s17 = sld [smem:[#allocation4 + %s378_s24]]  ;;  %v232_v44 = vadd.f32 %v231_v37, %v227_v33  ;;  %s361_s29 = scalar_lea.vmem [#allocation5], %s1709_s19  ;;  %v412_v55 = vrot.slane %v282_v42, 6 }
  0xcd   : >> { %s305_s22 = scalar_lea.vmem [#allocation5], %s1905_s11  ;;  %v362_v46 = vld [vmem:[%s361_s29] sm:$0x1]  ;;  %s1733_s15 = smul.u32 5, %s383_s3  ;;  %v327_v48 = vadd.f32 %v326_v41, %v322_v38 }
  0xce   : >> { %v306_v43 = vld [vmem:[%s305_s22] sm:$0x1]  ;;  %s350_s4 = scalar_lea.vmem [#allocation5], %s1696_s1  ;;  %s330_s18 = scalar_lea.vmem [#allocation5], %s1669_s23  ;;  %v430_v57 = vsel %vm429_vm0, %v232_v44, %v409_v47 }
  0xcf   : >> { %v351_v49 = vld [vmem:[%s350_s4] sm:$0x1]  ;;  %v307_v50 = vadd.f32 %v306_v43, %v302_v40  ;;  %s365_s9 = scalar_lea.vmem [#allocation5], %s1716_s5  ;;  %s1739_s27 = sld [smem:[#allocation4 + %s1733_s15]]  ;;  %v432_v0 = vsel %vm431_vm1, %v430_v57, %v412_v55 }
  0xd0   : >> { %v331_v51 = vld [vmem:[%s330_s18] sm:$0x1]  ;;  %s370_s8 = scalar_lea.vmem [#allocation5], %s1719_s26  ;;  %s388_s13 = sadd.s32 1, %s1733_s15  ;;  %v352_v56 = vadd.f32 %v351_v49, %v347_v45 }
  0xd1   : >> { %v366_v52 = vld [vmem:[%s365_s9] sm:$0x1]  ;;  %s393_s19 = sadd.s32 2, %s1733_s15  ;;  %s389_s1 = sld [smem:[#allocation4 + %s388_s13]]  ;;  %v332_v58 = vadd.f32 %v331_v51, %v327_v48  ;;  %v415_v62 = vrot.slane %v307_v50, 5 }
  0xd2   : >> { %v367_v53 = vadd.f32 %v366_v52, %v362_v46  ;;  %v371_v54 = vld [vmem:[%s370_s8] sm:$0x1]  ;;  %s355_s23 = scalar_lea.vmem [#allocation5], %s1704_s14  ;;  %s375_s7 = scalar_lea.vmem [#allocation5], %s1726_s16 }
  0xd3   : >> { %v356_v59 = vld [vmem:[%s355_s23] sm:$0x1]  ;;  %s394_s6 = sld [smem:[#allocation4 + %s393_s19]]  ;;  %s398_s25 = sadd.s32 3, %s1733_s15  ;;  %v418_v4 = vrot.slane %v332_v58, 4  ;;  %v434_v5 = vsel %vm433_vm2, %v432_v0, %v415_v62 }
  0xd4   : >> { %v372_v60 = vadd.f32 %v371_v54, %v367_v53  ;;  %v376_v61 = vld [vmem:[%s375_s7] sm:$0x1]  ;;  %s403_s28 = sadd.s32 4, %s1733_s15  ;;  %s399_s2 = sld [smem:[#allocation4 + %s398_s25]]  ;;  %v357_v1 = vadd.f32 %v356_v59, %v352_v56 }
  0xd5   : >> { %s404_s10 = sld [smem:[#allocation4 + %s403_s28]]  ;;  %s380_s5 = scalar_lea.vmem [#allocation5], %s1730_s17  ;;  %v436_v11 = vsel %vm435_vm3, %v434_v5, %v418_v4 }
  0xd6   : >> { %v377_v63 = vadd.f32 %v376_v61, %v372_v60  ;;  %v381_v2 = vld [vmem:[%s380_s5] sm:$0x1]  ;;  %s386_s30 = scalar_lea.vmem [#allocation5], %s1739_s27  ;;  %v421_v10 = vrot.slane %v357_v1, 3  ;;  %s1906_s26 = sld [smem:[#allocation26_spill]] }
  0xd7   : >> { %v387_v3 = vld [vmem:[%s386_s30] sm:$0x1]  ;;  %s390_s14 = scalar_lea.vmem [#allocation5], %s389_s1 }
  0xd8   : >> { %v382_v6 = vadd.f32 %v381_v2, %v377_v63  ;;  %v391_v7 = vld [vmem:[%s390_s14] sm:$0x1]  ;;  %v438_v17 = vsel %vm437_vm4, %v436_v11, %v421_v10 }
  0xd9   : >> { %v392_v8 = vadd.f32 %v391_v7, %v387_v3  ;;  %s395_s11 = scalar_lea.vmem [#allocation5], %s394_s6 }
  0xda   : >> { %v396_v9 = vld [vmem:[%s395_s11] sm:$0x1]  ;;  %s400_s3 = scalar_lea.vmem [#allocation5], %s399_s2  ;;  %v424_v15 = vrot.slane %v382_v6, 2 }
  0xdb   : >> { %v397_v12 = vadd.f32 %v396_v9, %v392_v8  ;;  %v401_v13 = vld [vmem:[%s400_s3] sm:$0x1]  ;;  %s405_s0 = scalar_lea.vmem [#allocation5], %s404_s10 }
  0xdc   : >> { %v406_v14 = vld [vmem:[%s405_s0] sm:$0x1]  ;;  %v440_v19 = vsel %vm439_vm5, %v438_v17, %v424_v15  ;;  %s1907_s20 = sshll.u32 %s1906_s26, 3  ;;  %s206_s9 = sadd.s32 1, %s1906_s26  }
  0xdd   : >> { %v402_v16 = vadd.f32 %v401_v13, %v397_v12  ;;  %s444_s12 = scalar_lea.vmem [#allocation2], %s1907_s20  ;;  %p203_p3 = scmp.ge.s32.totalorder %s206_s9, 16  }
  0xde   : > { %v1208_v23 = vld [vmem:[#allocation10] sm:$0xff] (%p203_p3)   ;;  %v1210_v25 = vld [vmem:[#allocation10 + $0x8] sm:$0xff] (%p203_p3)   ;;  %v1212_v27 = vld [vmem:[#allocation10 + $0x10] sm:$0xff] (%p203_p3)   ;;  %s1908_s21 = sld [smem:[#allocation20_spill]] (%p203_p3)  ;;  %s1910_s22 = sld [smem:[#allocation25_spill]] (%p203_p3) }
  0xdf   : >> { %v407_v18 = vadd.f32 %v406_v14, %v402_v16  ;;  %v1209_v24 = vld [vmem:[#allocation8] sm:$0xff] (%p203_p3)   ;;  %1043 = vmatprep.subr.bf16.mxu1 (%p203_p3), %v1208_v23  ;;  %v1211_v26 = vld [vmem:[#allocation8 + $0x8] sm:$0xff] (%p203_p3)   ;;  %v1213_v28 = vld [vmem:[#allocation8 + $0x10] sm:$0xff] (%p203_p3)   ;;  %s1911_s15 = sld [smem:[#allocation17_spill]] (%p203_p3)  ;;  %s1912_s4 = sld [smem:[#allocation23_spill]] (%p203_p3) }
  0xe0   : > { %205 = sbr.rel (!%p203_p3) target bundleno = 142 (0x8e), region = 126  ;;  %1075 = vmatprep.subr.bf16.mxu0 (%p203_p3), %v1209_v24  ;;  %1044 = vmatpush3.bf16.msra.mxu1 (%p203_p3), %v1208_v23  ;;  %v1214_v29 = vld [vmem:[#allocation10 + $0x18] sm:$0xff] (%p203_p3)   ;;  %v1216_v31 = vld [vmem:[#allocation10 + $0x20] sm:$0xff] (%p203_p3)   ;;  %v1218_v33 = vld [vmem:[#allocation10 + $0x28] sm:$0xff] (%p203_p3)   ;;  %s1913_s27 = sld [smem:[#allocation33_spill]] (%p203_p3) }
  0xe1   : >> { %v427_v20 = vrot.slane %v407_v18, 1  ;;  %1076 = vmatpush3.bf16.msra.mxu0 (%p203_p3), %v1209_v24  ;;  %1045 = vmatprep.subr.bf16.mxu1 (%p203_p3), %v1210_v25  ;;  %v1215_v30 = vld [vmem:[#allocation8 + $0x18] sm:$0xff] (%p203_p3)   ;;  %v1217_v32 = vld [vmem:[#allocation8 + $0x20] sm:$0xff] (%p203_p3)   ;;  %v1219_v37 = vld [vmem:[#allocation8 + $0x28] sm:$0xff] (%p203_p3)   ;;  %s1408_s23 = smov (%p203_p3), [#allocation11]  }
  0xe2   : > { %1077 = vmatprep.subr.bf16.mxu0 (%p203_p3), %v1211_v26  ;;  %v1220_v41 = vld [vmem:[#allocation10 + $0x30] sm:$0xff] (%p203_p3)   ;;  %v1222_v43 = vld [vmem:[#allocation10 + $0x38] sm:$0xff] (%p203_p3)   ;;  %s1322_s7 = sshll.u32 (%p203_p3), %s1408_s23, 4  ;;  %s1323_s7 = int_to_ptr.vmem [resolvable:$false] %s1322_s7 }
  0xe3   : >> { %v442_v21 = vsel %vm441_vm6, %v440_v19, %v427_v20  ;;  %v1221_v42 = vld [vmem:[#allocation8 + $0x30] sm:$0xff] (%p203_p3)   ;;  %v1223_v44 = vld [vmem:[#allocation8 + $0x38] sm:$0xff] (%p203_p3)   ;;  %s1324_s6 = scalar_lea.vmem (%p203_p3), %s1323_s7, 4096 }
  0xe4   : >> { %v443_v22 = vmul.f32 0.2, %v442_v21  ;;  %1046 = vmatpush3.bf16.msra.mxu1 (%p203_p3), %v1210_v25  ;;  %s1909_s16 = sshll.u32 (%p203_p3), %s1908_s21, 7  ;;  %s1010_s17 = sshll.u32 (%p203_p3), %s1908_s21, 11 }
  0xe5   : > { %1078 = vmatpush3.bf16.msra.mxu0 (%p203_p3), %v1211_v26  ;;  %1047 = vmatprep.subr.bf16.mxu1 (%p203_p3), %v1212_v27  ;;  %s1757_s24 = scalar_lea.vmem (%p203_p3), [#allocation5], %s1909_s16  ;;  %s847_s29 = sshll.u32 (%p203_p3), %s1910_s22, 4  ;;  %s1795_s29 = int_to_ptr.vmem [resolvable:$true] %s847_s29 }
  0xe6   : >> { %445 = vst [vmem:[%s444_s12] sm:$0xff] %v443_v22  ;;  %1079 = vmatprep.subr.bf16.mxu0 (%p203_p3), %v1213_v28  ;;  %v447_v36 = vld [vmem:[%s1757_s24] sm:$0xff] (%p203_p3)  ;;  %v448_v39 = vld [vmem:[%s1757_s24 + $0x8] sm:$0xff] (%p203_p3)  ;;  %v449_v47 = vld [vmem:[%s1757_s24 + $0x10] sm:$0xff] (%p203_p3)  ;;  %s1793_s8 = scalar_lea.hbm (%p203_p3), %s1913_s27, %s1010_s17  ;;  %s1914_s13 = sand.u32 (%p203_p3), 1, %s1911_s15  }
  0xe7   : > { %v463_v40 = vpack.c.bf16 %v448_v39, %v447_v36  ;;  %v450_v48 = vld [vmem:[%s1757_s24 + $0x18] sm:$0xff]  ;;  %v451_v51 = vld [vmem:[%s1757_s24 + $0x20] sm:$0xff]  ;;  %v452_v52 = vld [vmem:[%s1757_s24 + $0x28] sm:$0xff]  ;;  %s1802_s19 = scalar_lea.sflag [#allocation7], %s1914_s13  ;;  %s1318_s1 = scalar_lea.vmem %s1795_s29, 2048 }
  0xe8   : > { %1048 = vmatpush3.bf16.msra.mxu1 %v1212_v27  ;;  %v464_v54 = vpack.c.bf16 %v450_v48, %v449_v47  ;;  %v465_v56 = vpack.c.bf16 %v452_v52, %v451_v51  ;;  %v453_v59 = vld [vmem:[%s1757_s24 + $0x30] sm:$0xff]  ;;  %v454_v60 = vld [vmem:[%s1757_s24 + $0x38] sm:$0xff]  ;;  %v455_v63 = vld [vmem:[%s1757_s24 + $0x40] sm:$0xff]  ;;  %p1319_p4 = scmp.ne.s32.totalorder %s1795_s29, %s1318_s1  ;;  %p1915_p6 = scmp.ne.s32.totalorder %s1912_s4, 0 }
  0xe9   : > { %1080 = vmatpush3.bf16.msra.mxu0 %v1213_v28  ;;  %1049 = vmatprep.subr.bf16.mxu1 %v1214_v29  ;;  %v456_v0 = vld [vmem:[%s1757_s24 + $0x48] sm:$0xff]  ;;  %v466_v2 = vpack.c.bf16 %v454_v60, %v453_v59  ;;  %v457_v7 = vld [vmem:[%s1757_s24 + $0x50] sm:$0xff]  ;;  %v458_v8 = vld [vmem:[%s1757_s24 + $0x58] sm:$0xff]  ;;  %p1325_p9 = scmp.lt.s32.totalorder %s1795_s29, %s1323_s7  ;;  %p1326_p12 = scmp.lt.s32.totalorder %s1324_s6, %s1318_s1 }
  0xea   : > { %1081 = vmatprep.subr.bf16.mxu0 %v1215_v30  ;;  %1091 = vmatprep.mubr.bf16.mxu0 %v463_v40  ;;  %v467_v4 = vpack.c.bf16 %v456_v0, %v455_v63  ;;  %v459_v11 = vld [vmem:[%s1757_s24 + $0x60] sm:$0xff]  ;;  %v460_v12 = vld [vmem:[%s1757_s24 + $0x68] sm:$0xff]  ;;  %v468_v14 = vpack.c.bf16 %v458_v8, %v457_v7  ;;  %v461_v19 = vld [vmem:[%s1757_s24 + $0x70] sm:$0xff]  ;;  %p1320_p7 = pnand %p1319_p4, %p1915_p6 }
  0xeb   : > { %v469_v16 = vpack.c.bf16 %v460_v12, %v459_v11  ;;  %v462_v20 = vld [vmem:[%s1757_s24 + $0x78] sm:$0xff]  ;;  %p1327_p13 = por %p1326_p12, %p1325_p9 }
  0xec   : > { %1050 = vmatpush3.bf16.msra.mxu1 %v1214_v29  ;;  %v470_v22 = vpack.c.bf16 %v462_v20, %v461_v19  ;;  %p1321_p8 = pneg %p1320_p7 }
  0xed   : > { %1082 = vmatpush3.bf16.msra.mxu0 %v1215_v30  ;;  %1051 = vmatprep.subr.bf16.mxu1 %v1216_v31  ;;  %v487_v34 = vld [vmem:[#allocation2] sm:$0xff]  ;;  %v488_v35 = vld [vmem:[#allocation2 + $0x8] sm:$0xff]  ;;  %v489_v45 = vld [vmem:[#allocation2 + $0x10] sm:$0xff] }
  0xee   : > { %1083 = vmatprep.subr.bf16.mxu0 %v1217_v32  ;;  %v503_v38 = vpack.c.bf16 %v488_v35, %v487_v34  ;;  %v490_v46 = vld [vmem:[#allocation2 + $0x18] sm:$0xff]  ;;  %v491_v49 = vld [vmem:[#allocation2 + $0x20] sm:$0xff]  ;;  %v492_v50 = vld [vmem:[#allocation2 + $0x28] sm:$0xff]  ;;  %p1328_p2 = pnand %p1327_p13, %p1321_p8 }
  0xef   : > { %v504_v53 = vpack.c.bf16 %v490_v46, %v489_v45  ;;  %v505_v55 = vpack.c.bf16 %v492_v50, %v491_v49  ;;  %v493_v57 = vld [vmem:[#allocation2 + $0x30] sm:$0xff]  ;;  %v494_v58 = vld [vmem:[#allocation2 + $0x38] sm:$0xff]  ;;  %v495_v61 = vld [vmem:[#allocation2 + $0x40] sm:$0xff] }
  0xf0   : > { %1052 = vmatpush3.bf16.msra.mxu1 %v1216_v31  ;;  %1059 = vmatprep.mubr.bf16.mxu1 %v503_v38  ;;  %v496_v62 = vld [vmem:[#allocation2 + $0x48] sm:$0xff]  ;;  %v506_v1 = vpack.c.bf16 %v494_v58, %v493_v57  ;;  %v497_v5 = vld [vmem:[#allocation2 + $0x50] sm:$0xff]  ;;  %v498_v6 = vld [vmem:[#allocation2 + $0x58] sm:$0xff] }
  0xf1   : > { %1084 = vmatpush3.bf16.msra.mxu0 %v1217_v32  ;;  %1053 = vmatprep.subr.bf16.mxu1 %v1218_v33  ;;  %v507_v3 = vpack.c.bf16 %v496_v62, %v495_v61  ;;  %v499_v9 = vld [vmem:[#allocation2 + $0x60] sm:$0xff]  ;;  %v500_v10 = vld [vmem:[#allocation2 + $0x68] sm:$0xff]  ;;  %v508_v13 = vpack.c.bf16 %v498_v6, %v497_v5  ;;  %v501_v17 = vld [vmem:[#allocation2 + $0x70] sm:$0xff] }
  0xf2   : > { %1085 = vmatprep.subr.bf16.mxu0 %v1219_v37  ;;  %v509_v15 = vpack.c.bf16 %v500_v10, %v499_v9  ;;  %v502_v18 = vld [vmem:[#allocation2 + $0x78] sm:$0xff] }
  0xf3   : > { %v510_v21 = vpack.c.bf16 %v502_v18, %v501_v17 }
  0xf4   : > { %1054 = vmatpush3.bf16.msra.mxu1 %v1218_v33 }
  0xf5   : > { %1086 = vmatpush3.bf16.msra.mxu0 %v1219_v37  ;;  %1055 = vmatprep.subr.bf16.mxu1 %v1220_v41 }
  0xf6   : > { %1087 = vmatprep.subr.bf16.mxu0 %v1221_v42 }
  0xf8   : > { %1056 = vmatpush3.bf16.msra.mxu1 %v1220_v41 }
  0xf9   : > { %1088 = vmatpush3.bf16.msra.mxu0 %v1221_v42  ;;  %1057 = vmatprep.subr.bf16.mxu1 %v1222_v43 }
  0xfa   : > { %1089 = vmatprep.subr.bf16.mxu0 %v1223_v44 }
  0xfc   : > { %1058 = vmatpush3.bf16.msra.mxu1 %v1222_v43 }
  0xfd   : > { %1090 = vmatpush3.bf16.msra.mxu0 %v1223_v44 }
  0xff   : > { %1060 = vmatmul.mubr.bf16.vlgmr.msra.gmra.mrb[0].mxu1 %v504_v53 }
 0x100   : > { %1092 = vmatmul.mubr.bf16.vlgmr.msra.gmra.mrb[0].mxu0 %v464_v54  ;;  %1063 = vmatprep.mubr.bf16.mxu1 %v505_v55 }
 0x101   : > { %1095 = vmatprep.mubr.bf16.mxu0 %v465_v56 }
 0x107   : > { %1064 = vmatmul.mubr.bf16.gmra.mrb[4].mxu1 %v506_v1 }
 0x108   : > { %1096 = vmatmul.mubr.bf16.gmra.mrb[4].mxu0 %v466_v2  ;;  %1067 = vmatprep.mubr.bf16.mxu1 %v507_v3 }
 0x109   : > { %1099 = vmatprep.mubr.bf16.mxu0 %v467_v4 }
 0x10f   : > { %1068 = vmatmul.mubr.bf16.gmra.mrb[8].mxu1 %v508_v13 }
 0x110   : > { %1100 = vmatmul.mubr.bf16.gmra.mrb[8].mxu0 %v468_v14  ;;  %1071 = vmatprep.mubr.bf16.mxu1 %v509_v15 }
 0x111   : > { %1103 = vmatprep.mubr.bf16.mxu0 %v469_v16 }
 0x117   : > { %1072 = vmatmul.mubr.bf16.gmra.mrb[12].mxu1 %v510_v21 }
 0x118   : > { %1104 = vmatmul.mubr.bf16.gmra.mrb[12].mxu0 %v470_v22 }
 0x1d2   : > { %v1061_v23 = vpop.f32.mrb[0].mxu1 }
 0x1d3   : > { %v1093_v24 = vpop.f32.mrb[0].mxu0  ;;  %v609_v25 = vpop.f32.mrb[1].mxu1 }
 0x1d4   : > { %v763_v26 = vadd.f32 %v1093_v24, %v1061_v23  ;;  %v754_v27 = vpop.f32.mrb[1].mxu0  ;;  %v1062_v28 = vpop.f32.mrb[2].mxu1 }
 0x1d5   : > { %v755_v29 = vadd.f32 %v754_v27, %v609_v25  ;;  %v1094_v30 = vpop.f32.mrb[2].mxu0  ;;  %v612_v31 = vpop.f32.mrb[3].mxu1 }
 0x1d6   : > { %819 = vst [vmem:[%s1910_s22 + $0x10] sm:$0xff] %v763_v26  ;;  %v766_v32 = vadd.f32 %v1094_v30, %v1062_v28  ;;  %v757_v33 = vpop.f32.mrb[3].mxu0 }
 0x1d7   : > { %817 = vst [vmem:[%s1910_s22] sm:$0xff] %v755_v29  ;;  %v758_v34 = vadd.f32 %v757_v33, %v612_v31 }
 0x1d8   : > { %820 = vst [vmem:[%s1910_s22 + $0x18] sm:$0xff] %v766_v32 }
 0x1d9   : > { %818 = vst [vmem:[%s1910_s22 + $0x8] sm:$0xff] %v758_v34 }
 0x1da   : > { %v1065_v35 = vpop.f32.mrb[4].mxu1 }
 0x1db   : > { %v1097_v36 = vpop.f32.mrb[4].mxu0  ;;  %v625_v37 = vpop.f32.mrb[5].mxu1 }
 0x1dc   : > { %v779_v38 = vadd.f32 %v1097_v36, %v1065_v35  ;;  %v770_v39 = vpop.f32.mrb[5].mxu0  ;;  %v1066_v40 = vpop.f32.mrb[6].mxu1 }
 0x1dd   : > { %v771_v41 = vadd.f32 %v770_v39, %v625_v37  ;;  %v1098_v42 = vpop.f32.mrb[6].mxu0  ;;  %v628_v43 = vpop.f32.mrb[7].mxu1 }
 0x1de   : > { %823 = vst [vmem:[%s1910_s22 + $0x30] sm:$0xff] %v779_v38  ;;  %v782_v44 = vadd.f32 %v1098_v42, %v1066_v40  ;;  %v773_v45 = vpop.f32.mrb[7].mxu0 }
 0x1df   : > { %821 = vst [vmem:[%s1910_s22 + $0x20] sm:$0xff] %v771_v41  ;;  %v774_v46 = vadd.f32 %v773_v45, %v628_v43 }
 0x1e0   : > { %824 = vst [vmem:[%s1910_s22 + $0x38] sm:$0xff] %v782_v44 }
 0x1e1   : > { %822 = vst [vmem:[%s1910_s22 + $0x28] sm:$0xff] %v774_v46 }
 0x1e2   : > { %v1069_v47 = vpop.f32.mrb[8].mxu1 }
 0x1e3   : > { %v1101_v48 = vpop.f32.mrb[8].mxu0  ;;  %v641_v49 = vpop.f32.mrb[9].mxu1 }
 0x1e4   : > { %v795_v50 = vadd.f32 %v1101_v48, %v1069_v47  ;;  %v786_v51 = vpop.f32.mrb[9].mxu0  ;;  %v1070_v52 = vpop.f32.mrb[10].mxu1 }
 0x1e5   : > { %v787_v53 = vadd.f32 %v786_v51, %v641_v49  ;;  %v1102_v54 = vpop.f32.mrb[10].mxu0  ;;  %v644_v55 = vpop.f32.mrb[11].mxu1 }
 0x1e6   : > { %827 = vst [vmem:[%s1910_s22 + $0x50] sm:$0xff] %v795_v50  ;;  %v798_v56 = vadd.f32 %v1102_v54, %v1070_v52  ;;  %v789_v57 = vpop.f32.mrb[11].mxu0 }
 0x1e7   : > { %825 = vst [vmem:[%s1910_s22 + $0x40] sm:$0xff] %v787_v53  ;;  %v790_v58 = vadd.f32 %v789_v57, %v644_v55 }
 0x1e8   : > { %828 = vst [vmem:[%s1910_s22 + $0x58] sm:$0xff] %v798_v56 }
 0x1e9   : > { %826 = vst [vmem:[%s1910_s22 + $0x48] sm:$0xff] %v790_v58 }
 0x1ea   : > { %v1073_v59 = vpop.f32.mrb[12].mxu1 }
 0x1eb   : > { %v1105_v60 = vpop.f32.mrb[12].mxu0  ;;  %v657_v61 = vpop.f32.mrb[13].mxu1 }
 0x1ec   : > { %v811_v62 = vadd.f32 %v1105_v60, %v1073_v59  ;;  %v802_v63 = vpop.f32.mrb[13].mxu0  ;;  %v1074_v0 = vpop.f32.mrb[14].mxu1 }
 0x1ed   : > { %v803_v1 = vadd.f32 %v802_v63, %v657_v61  ;;  %v1106_v2 = vpop.f32.mrb[14].mxu0  ;;  %v660_v3 = vpop.f32.mrb[15].mxu1 }
 0x1ee   : > { %831 = vst [vmem:[%s1910_s22 + $0x70] sm:$0xff] %v811_v62  ;;  %v814_v4 = vadd.f32 %v1106_v2, %v1074_v0  ;;  %v805_v5 = vpop.f32.mrb[15].mxu0 }
 0x1ef   : > { %829 = vst [vmem:[%s1910_s22 + $0x60] sm:$0xff] %v803_v1  ;;  %v806_v6 = vadd.f32 %v805_v5, %v660_v3 }
 0x1f0   : > { %832 = vst [vmem:[%s1910_s22 + $0x78] sm:$0xff] %v814_v4 }
 0x1f1   : > { %830 = vst [vmem:[%s1910_s22 + $0x68] sm:$0xff] %v806_v6 }
 0x1f2   : > { %1331 = shalt.err (!%p1328_p2)
}
 0x1f3   : > { %s1332_s25 = scalar_lea.hbm %s1793_s8, 2048  ;;  %s1336_s10 = scalar_lea.hbm %s1913_s27, 4096 }
 0x1f4   : > { %p1333_p10 = scmp.ne.s32.totalorder %s1793_s8, %s1332_s25  ;;  %p1337_p0 = scmp.lt.u32.totalorder %s1793_s8, %s1913_s27 }
 0x1f5   : > { %p1338_p1 = scmp.lt.u32.totalorder %s1336_s10, %s1332_s25  ;;  %p1340_p4 = scmp.lt.u32.totalorder %s1332_s25, %s1793_s8 }
 0x1f6   : > { %p1334_p5 = pnand %p1333_p10, %p1915_p6 }
 0x1f7   : > { %p1339_p3 = por %p1338_p1, %p1337_p0 }
 0x1f8   : > { %p1335_p11 = pneg %p1334_p5 }
 0x1f9   : > { %p1341_p7 = por %p1340_p4, %p1339_p3 }
 0x1fb   : > { %p1342_p8 = pnand %p1341_p7, %p1335_p11 }
 0x1fd   : > { %1345 = shalt.err (!%p1342_p8)
}
 0x1fe   : > { %s1409_s14 = smov 128   ;;  %s1410_s11 = smov 8  }
 0x1ff   : > { %1135 = dma.vmem_to_hbm [thread:$0]  (%p1915_p6), %s1795_s29, 2048, %s1793_s8, %s1802_s19, %s1409_s14, %s1409_s14, %s1410_s11  }
 0x200 PF: > { %s1916_s26 = sld [smem:[#allocation19_spill]]  ;;  %s1917_s3 = sld [smem:[#allocation16_spill]] }
 0x201   : > { %s1918_s0 = sld [smem:[#allocation24_spill]] }
 0x206   : > { %p1157_p9 = scmp.ge.s32.totalorder %s1916_s26, 2  ;;  %s862_s20 = sand.u32 1, %s1917_s3  }
 0x207   : > { %p1919_p12 = scmp.ne.s32.totalorder %s1918_s0, 0  ;;  %s863_s12 = scalar_lea.sflag [#allocation7], %s862_s20 }
 0x209   : > { %p1148_p13 = pnand %p1157_p9, %p1919_p12 }
 0x20b   : > { %1377 = dma.done.wait (!%p1148_p13), %s863_s12, 2048  }
 0x20c   : > { %1379 = vsyncadd (!%p1148_p13), %s863_s12, 4294965248  ;;  %s1920_s5 = sld [smem:[#allocation21_spill]]  ;;  %s1921_s28 = sld [smem:[#allocation17_spill]] }
 0x20d   : > { %s1922_s29 = sld [smem:[#allocation18_spill]]  ;;  %s1923_s30 = sld [smem:[#allocation22_spill]] }
 0x212   : > { %p20_p2 = scmp.ge.s32.totalorder %s1920_s5, 4  }
 0x214   :  { %22 = sbr.rel (!%p20_p2) target bundleno = 22 (0x16), region = 137 }
 0x21b   :  { %868 = vsyncpa [#allocation6], 1 }
 0x21c   :  { %870 = vsyncpa [#allocation6 + $0x1], 1 }
 0x21d   :  { %871 = vsyncpa [#allocation9], 1 }
 0x21e   :  { %872 = vsyncpa [#allocation7], 1 }
 0x21f   :  { %874 = vsyncpa [#allocation7 + $0x1], 1 }

</bundles_post_ra>
